<compile_context>
chip_gen: v7x
topology: tpu7x:2x2x1
jax: 0.10.0
libtpu: 0.0.40
codegen_flags: <defaults>
</compile_context>

<pallas_src>
import jax
import jax.numpy as jnp
from jax.experimental import pallas as pl
from jax.experimental.pallas import tpu as pltpu


def _round_up(x, m):
    return ((x + m - 1) // m) * m


def _round_down(x, m):
    return (x // m) * m


def alfm_kernel(uid_ref, udoc_ref, iid_ref, idoc_ref,
                wfuse_ref, bfuse_ref, wa1_ref, wa2_ref,
                wr1_ref, br1_ref, wr2_ref,
                ba1_ref, br2_ref,
                out_ref):
    f32 = jnp.float32
    bf16 = jnp.bfloat16
    E = uid_ref.shape[-1]

    # user_embed = id_embed + doc ; item analogous.  Adds stay in bf16 so the
    # fused matmul below gets native bf16 MXU operands.
    x = jnp.concatenate(
        [uid_ref[...] + udoc_ref[...], iid_ref[...] + idoc_ref[...]],
        axis=-1)                                               # (bt, 2E) bf16

    # user_fusion / item_fusion fused into one MXU call via block_diag(Wu, Wi):
    # (bt, 2E) @ (2E, 2E), bf16 operands, f32 accumulation, then bias + ReLU.
    fused = jnp.maximum(
        jnp.dot(x, wfuse_ref[...], preferred_element_type=f32)
        + bfuse_ref[...].astype(f32), 0.0)                     # (bt, 2E) f32

    # att_layer1: Linear(2E, 1) + ReLU == lane reduction (output dim is 1, MXU
    # would be wasted here).
    a = jnp.maximum(
        jnp.sum(fused * wa1_ref[...].astype(f32), axis=-1, keepdims=True)
        + ba1_ref[0, 0], 0.0)                                  # (bt, 1)

    # att_layer2: Linear(1, E, bias=False) -> softmax over the embedding dim.
    logits = a * wa2_ref[...].astype(f32)                      # (bt, E)
    m = jnp.max(logits, axis=-1, keepdims=True)
    e = jnp.exp(logits - m)
    att = e * pl.reciprocal(jnp.sum(e, axis=-1, keepdims=True), approx=True)

    # interact = att_weights * user_embed * item_embed
    ue = fused[:, :E]
    ie = fused[:, E:]
    interact = att * ue * ie                                   # (bt, E) f32

    # rating_predict: Linear(E,E) + ReLU + Dropout(identity, eval) + Linear(E,1)
    h = jnp.maximum(
        jnp.dot(interact.astype(bf16), wr1_ref[...],
                preferred_element_type=f32)
        + br1_ref[...].astype(f32), 0.0)                       # (bt, E) f32

    # Lane-dense prediction row: (1, bt) = wr2 @ h^T (bf16 MXU, rhs transposed)
    # -- avoids a masked (bt, 1) column store.  The per-step XLU transpose of h
    # is cheap at small E (low-priority follow-up if E grows).
    pred = jax.lax.dot_general(
        wr2_ref[...], h.astype(bf16),
        dimension_numbers=(((1,), (1,)), ((), ())),
        preferred_element_type=f32) + br2_ref[0, 0]            # (1, bt)
    out_ref[...] = pred.reshape(out_ref.shape)                 # (1, 1, bt)


_MIN_GRID_STEPS = 8            # keep both v7x TensorCores busy on large B
_VMEM_STREAM_BUDGET = 32 << 20  # conservative: v7x has 64 MiB physical per TC


def _choose_bt(B, E, block_b):
    """Batch-tile (sublane) size for the activation blocks."""
    if B < 128:
        # Small batch: either one full-batch block or small 8-row tiles.
        bt = min(_round_up(max(block_b, 8), 8), _round_up(B, 8))
        return B if bt >= B else bt
    # Large batch: 128-row granularity (unmasked lane-dense output stores,
    # clean bf16 sublane packing); keep >= _MIN_GRID_STEPS grid steps (v7x has
    # 2 TCs sharing the grid); cap so double-buffered streams + f32 temps fit
    # a conservative VMEM budget.
    bt = _round_up(max(block_b, 128), 128)
    steps_cap = max(128, _round_down(B // _MIN_GRID_STEPS, 128))
    per_row_bytes = 4 * 2 * E * 2 + 14 * E * 4   # dbl-buffered bf16 streams + f32 temps
    vmem_cap = max(128, _round_down(_VMEM_STREAM_BUDGET // per_row_bytes, 128))
    return min(bt, steps_cap, vmem_cap)


def alfm_forward(uids, iids, user_doc, item_doc, params, *, block_b=4096):
    """Embedding gathers in JAX glue; fusion/attention/rating in one Pallas kernel."""
    user_id_embed = jnp.take(params["user_emb"], uids, axis=0)    # (B, E) bf16
    item_id_embed = jnp.take(params["item_emb"], iids, axis=0)    # (B, E) bf16
    B, E = user_id_embed.shape

    # Fused user/item fusion parameters (tiny, built once per call).
    pdt = params["wuf"].dtype
    z = jnp.zeros((E, E), pdt)
    wfuse = jnp.concatenate(
        [jnp.concatenate([params["wuf"], z], axis=1),
         jnp.concatenate([z, params["wif"]], axis=1)], axis=0)    # (2E, 2E)
    bfuse = jnp.concatenate([params["buf"], params["bif"]], axis=1)     # (1, 2E)
    wa1 = jnp.concatenate([params["wa1_u"], params["wa1_i"]], axis=1)   # (1, 2E)

    bt = _choose_bt(B, E, block_b)
    grid = (pl.cdiv(B, bt),)     # no input padding: ragged tail rows are
                                 # garbage, computed independently, sliced off.

    act_spec = pl.BlockSpec((bt, E), lambda i: (i, 0))            # batch-tiled
    res = lambda shape: pl.BlockSpec(shape, lambda i: (0, 0))     # VMEM-resident
    smem_spec = pl.BlockSpec(memory_space=pltpu.MemorySpace.SMEM)  # scalars

    in_specs = [act_spec, act_spec, act_spec, act_spec,
                res((2 * E, 2 * E)), res((1, 2 * E)), res((1, 2 * E)),
                res((1, E)), res((E, E)), res((1, E)), res((1, E)),
                smem_spec, smem_spec]
    out_specs = pl.BlockSpec((1, 1, bt), lambda i: (i, 0, 0))

    # VMEM budget from actual use: 4 double-buffered bf16 streams + dbl-buffered
    # f32 output row + resident params + f32 intermediates (headroom x2).
    est = (4 * 2 * bt * E * 2 + 2 * bt * 4
           + (4 * E * E + 8 * E) * 2
           + 14 * bt * E * 4)
    vmem_limit = int(min(48 << 20, max(16 << 20, 2 * est)))

    pred = pl.pallas_call(
        alfm_kernel,
        out_shape=jax.ShapeDtypeStruct((grid[0], 1, bt), jnp.float32),
        grid=grid,
        in_specs=in_specs,
        out_specs=out_specs,
        compiler_params=pltpu.CompilerParams(
            dimension_semantics=("parallel",),
            vmem_limit_bytes=vmem_limit),
    )(user_id_embed, user_doc, item_id_embed, item_doc,
      wfuse, bfuse, wa1, params["wa2"],
      params["wr1"], params["br1"], params["wr2"],
      params["ba1"], params["br2"])

    return pred.reshape(grid[0] * bt)[:B]           # matches prediction.squeeze(1)


def alfm_reference(uids, iids, user_doc, item_doc, params):
    """Pure-JAX f32 reference of the PyTorch forward (same bf16-stored data)."""
    f32 = jnp.float32
    ue = (jnp.take(params["user_emb"], uids, axis=0).astype(f32)
          + user_doc.astype(f32))
    ie = (jnp.take(params["item_emb"], iids, axis=0).astype(f32)
          + item_doc.astype(f32))
    ue = jax.nn.relu(ue @ params["wuf"].astype(f32) + params["buf"].astype(f32))
    ie = jax.nn.relu(ie @ params["wif"].astype(f32) + params["bif"].astype(f32))
    a = jax.nn.relu(
        jnp.sum(ue * params["wa1_u"].astype(f32), -1, keepdims=True)
        + jnp.sum(ie * params["wa1_i"].astype(f32), -1, keepdims=True)
        + params["ba1"][0, 0])
    att = jax.nn.softmax(a * params["wa2"].astype(f32), axis=-1)
    interact = att * ue * ie
    h = jax.nn.relu(interact @ params["wr1"].astype(f32)
                    + params["br1"].astype(f32))
    return (jnp.sum(h * params["wr2"].astype(f32), -1)
            + params["br2"][0, 0])


def init_params(key, user_num, item_num, E):
    """Parameters stored in bf16 (halves HBM traffic); true scalars stay f32."""
    ks = jax.random.split(key, 12)
    bf = jnp.bfloat16

    def u(k, shape, s=0.1):
        return jax.random.uniform(k, shape, jnp.float32, -s, s).astype(bf)

    return {
        "user_emb": u(ks[0], (user_num, E), 0.5),
        "item_emb": u(ks[1], (item_num, E), 0.5),
        "wuf": u(ks[2], (E, E)), "buf": jnp.full((1, E), 0.1, bf),
        "wif": u(ks[3], (E, E)), "bif": jnp.full((1, E), 0.1, bf),
        "wa1_u": u(ks[4], (1, E)), "wa1_i": u(ks[5], (1, E)),
        "ba1": jnp.full((1, 1), 0.1, jnp.float32),
        "wa2": u(ks[6], (1, E)),
        "wr1": u(ks[7], (E, E)), "br1": jnp.full((1, E), 0.1, bf),
        "wr2": u(ks[8], (1, E)), "br2": jnp.full((1, 1), 0.1, jnp.float32),
    }


if __name__ == "__main__":
    B, E = 20, 32
    user_num, item_num = 40, 40
    key = jax.random.PRNGKey(0)
    kp, ku, ki, kud, kid = jax.random.split(key, 5)

    params = init_params(kp, user_num, item_num, E)
    uids = jax.random.randint(ku, (B,), 0, user_num)
    iids = jax.random.randint(ki, (B,), 0, item_num)
    user_doc = jax.random.normal(kud, (B, E), jnp.float32).astype(jnp.bfloat16)
    item_doc = jax.random.normal(kid, (B, E), jnp.float32).astype(jnp.bfloat16)

    # Small block_b so the demo exercises a multi-step grid with a ragged
    # (non-divisible) tail block; production default is block_b=4096.
    pred = jax.block_until_ready(
        alfm_forward(uids, iids, user_doc, item_doc, params, block_b=8))
    ref = jax.block_until_ready(
        alfm_reference(uids, iids, user_doc, item_doc, params))

    assert pred.shape == (B,)
    err = jnp.max(jnp.abs(pred - ref))
    assert jnp.allclose(pred, ref, atol=2e-2, rtol=2e-2), f"max abs err {err}"
    print("KERNEL_OK")
</pallas_src>

<mosaic_0001>
module attributes {stable_mosaic.version = 11 : i64} {
  func.func @alfm_kernel(%arg0: i32, %arg1: memref<8x32xbf16, #tpu.memory_space<vmem>>, %arg2: memref<8x32xbf16, #tpu.memory_space<vmem>>, %arg3: memref<8x32xbf16, #tpu.memory_space<vmem>>, %arg4: memref<8x32xbf16, #tpu.memory_space<vmem>>, %arg5: memref<64x64xbf16, #tpu.memory_space<vmem>>, %arg6: memref<1x64xbf16, #tpu.memory_space<vmem>>, %arg7: memref<1x64xbf16, #tpu.memory_space<vmem>>, %arg8: memref<1x32xbf16, #tpu.memory_space<vmem>>, %arg9: memref<32x32xbf16, #tpu.memory_space<vmem>>, %arg10: memref<1x32xbf16, #tpu.memory_space<vmem>>, %arg11: memref<1x32xbf16, #tpu.memory_space<vmem>>, %arg12: memref<1x1xf32, #tpu.memory_space<smem>>, %arg13: memref<1x1xf32, #tpu.memory_space<smem>>, %arg14: memref<1x1x8xf32, #tpu.memory_space<vmem>>) attributes {dimension_semantics = [#tpu.dimension_semantics<parallel>], iteration_bounds = array<i64: 3>, scalar_prefetch = 0 : i64, scratch_operands = 0 : i64, tpu.core_type = #tpu.core_type<tc>, window_params = [{transform_indices = @transform_0, window_bounds = array<i64: 8, 32>}, {transform_indices = @transform_1, window_bounds = array<i64: 8, 32>}, {transform_indices = @transform_2, window_bounds = array<i64: 8, 32>}, {transform_indices = @transform_3, window_bounds = array<i64: 8, 32>}, {pipeline_mode = #tpu.pipeline_mode<synchronous>, transform_indices = @transform_4, window_bounds = array<i64: 64, 64>}, {pipeline_mode = #tpu.pipeline_mode<synchronous>, transform_indices = @transform_5, window_bounds = array<i64: 1, 64>}, {pipeline_mode = #tpu.pipeline_mode<synchronous>, transform_indices = @transform_6, window_bounds = array<i64: 1, 64>}, {pipeline_mode = #tpu.pipeline_mode<synchronous>, transform_indices = @transform_7, window_bounds = array<i64: 1, 32>}, {pipeline_mode = #tpu.pipeline_mode<synchronous>, transform_indices = @transform_8, window_bounds = array<i64: 32, 32>}, {pipeline_mode = #tpu.pipeline_mode<synchronous>, transform_indices = @transform_9, window_bounds = array<i64: 1, 32>}, {pipeline_mode = #tpu.pipeline_mode<synchronous>, transform_indices = @transform_10, window_bounds = array<i64: 1, 32>}, {transform_indices = @transform_11, window_bounds = array<i64: 1, 1>}, {transform_indices = @transform_12, window_bounds = array<i64: 1, 1>}, {transform_indices = @transform_13, window_bounds = array<i64: 1, 1, 8>}]} {
    %c0 = arith.constant 0 : index
    %c0_0 = arith.constant 0 : index
    %0 = vector.load %arg1[%c0, %c0_0] : memref<8x32xbf16, #tpu.memory_space<vmem>>, vector<8x32xbf16>
    %c0_1 = arith.constant 0 : index
    %c0_2 = arith.constant 0 : index
    %1 = vector.load %arg2[%c0_1, %c0_2] : memref<8x32xbf16, #tpu.memory_space<vmem>>, vector<8x32xbf16>
    %2 = arith.addf %0, %1 : vector<8x32xbf16>
    %c0_3 = arith.constant 0 : index
    %c0_4 = arith.constant 0 : index
    %3 = vector.load %arg3[%c0_3, %c0_4] : memref<8x32xbf16, #tpu.memory_space<vmem>>, vector<8x32xbf16>
    %c0_5 = arith.constant 0 : index
    %c0_6 = arith.constant 0 : index
    %4 = vector.load %arg4[%c0_5, %c0_6] : memref<8x32xbf16, #tpu.memory_space<vmem>>, vector<8x32xbf16>
    %5 = arith.addf %3, %4 : vector<8x32xbf16>
    %6 = tpu.concatenate %2, %5 in 1 : vector<8x32xbf16>, vector<8x32xbf16> -> vector<8x64xbf16>
    %c0_7 = arith.constant 0 : index
    %c0_8 = arith.constant 0 : index
    %7 = vector.load %arg5[%c0_7, %c0_8] : memref<64x64xbf16, #tpu.memory_space<vmem>>, vector<64x64xbf16>
    %cst = arith.constant dense<0.000000e+00> : vector<8x64xf32>
    %8 = tpu.matmul %6, %7, %cst {dimension_numbers = #tpu.dot_dimension_numbers<[1], [0], [0], [1], [0, 0, 1, 1], [], []>} : vector<8x64xbf16>, vector<64x64xbf16>, vector<8x64xf32> -> vector<8x64xf32>
    %c0_9 = arith.constant 0 : index
    %c0_10 = arith.constant 0 : index
    %9 = vector.load %arg6[%c0_9, %c0_10] : memref<1x64xbf16, #tpu.memory_space<vmem>>, vector<1x64xbf16>
    %10 = arith.extf %9 : vector<1x64xbf16> to vector<1x64xf32>
    %11 = vector.broadcast %10 : vector<1x64xf32> to vector<8x64xf32>
    %12 = arith.addf %8, %11 : vector<8x64xf32>
    %cst_11 = arith.constant 0.000000e+00 : f32
    %13 = vector.broadcast %cst_11 : f32 to vector<8x64xf32>
    %14 = arith.maximumf %12, %13 : vector<8x64xf32>
    %c0_12 = arith.constant 0 : index
    %c0_13 = arith.constant 0 : index
    %15 = vector.load %arg7[%c0_12, %c0_13] : memref<1x64xbf16, #tpu.memory_space<vmem>>, vector<1x64xbf16>
    %16 = arith.extf %15 : vector<1x64xbf16> to vector<1x64xf32>
    %17 = vector.broadcast %16 : vector<1x64xf32> to vector<8x64xf32>
    %18 = arith.mulf %14, %17 : vector<8x64xf32>
    %cst_14 = arith.constant dense<0.000000e+00> : vector<8xf32>
    %19 = vector.multi_reduction <add>, %18, %cst_14 [1] : vector<8x64xf32> to vector<8xf32>
    %20 = vector.shape_cast %19 : vector<8xf32> to vector<8x1xf32>
    %c0_15 = arith.constant 0 : index
    %c0_16 = arith.constant 0 : index
    %21 = memref.load %arg12[%c0_15, %c0_16] : memref<1x1xf32, #tpu.memory_space<smem>>
    %22 = vector.broadcast %21 : f32 to vector<8x1xf32>
    %23 = arith.addf %20, %22 : vector<8x1xf32>
    %cst_17 = arith.constant 0.000000e+00 : f32
    %24 = vector.broadcast %cst_17 : f32 to vector<8x1xf32>
    %25 = arith.maximumf %23, %24 : vector<8x1xf32>
    %c0_18 = arith.constant 0 : index
    %c0_19 = arith.constant 0 : index
    %26 = vector.load %arg8[%c0_18, %c0_19] : memref<1x32xbf16, #tpu.memory_space<vmem>>, vector<1x32xbf16>
    %27 = arith.extf %26 : vector<1x32xbf16> to vector<1x32xf32>
    %28 = vector.broadcast %25 : vector<8x1xf32> to vector<8x32xf32>
    %29 = vector.broadcast %27 : vector<1x32xf32> to vector<8x32xf32>
    %30 = arith.mulf %28, %29 : vector<8x32xf32>
    %cst_20 = arith.constant dense<0xFF800000> : vector<8xf32>
    %31 = vector.multi_reduction <maximumf>, %30, %cst_20 [1] : vector<8x32xf32> to vector<8xf32>
    %32 = vector.shape_cast %31 : vector<8xf32> to vector<8x1xf32>
    %33 = vector.broadcast %32 : vector<8x1xf32> to vector<8x32xf32>
    %34 = arith.subf %30, %33 : vector<8x32xf32>
    %35 = math.exp %34 : vector<8x32xf32>
    %cst_21 = arith.constant dense<0.000000e+00> : vector<8xf32>
    %36 = vector.multi_reduction <add>, %35, %cst_21 [1] : vector<8x32xf32> to vector<8xf32>
    %37 = vector.shape_cast %36 : vector<8xf32> to vector<8x1xf32>
    %38 = tpu.reciprocal %37 {approx = true} : vector<8x1xf32> -> vector<8x1xf32>
    %39 = vector.broadcast %38 : vector<8x1xf32> to vector<8x32xf32>
    %40 = arith.mulf %35, %39 : vector<8x32xf32>
    %41 = vector.extract_strided_slice %14 {offsets = [0, 0], sizes = [8, 32], strides = [1, 1]} : vector<8x64xf32> to vector<8x32xf32>
    %42 = vector.extract_strided_slice %14 {offsets = [0, 32], sizes = [8, 32], strides = [1, 1]} : vector<8x64xf32> to vector<8x32xf32>
    %43 = arith.mulf %40, %41 : vector<8x32xf32>
    %44 = arith.mulf %43, %42 : vector<8x32xf32>
    %45 = arith.truncf %44 : vector<8x32xf32> to vector<8x32xbf16>
    %c0_22 = arith.constant 0 : index
    %c0_23 = arith.constant 0 : index
    %46 = vector.load %arg9[%c0_22, %c0_23] : memref<32x32xbf16, #tpu.memory_space<vmem>>, vector<32x32xbf16>
    %cst_24 = arith.constant dense<0.000000e+00> : vector<8x32xf32>
    %47 = tpu.matmul %45, %46, %cst_24 {dimension_numbers = #tpu.dot_dimension_numbers<[1], [0], [0], [1], [0, 0, 1, 1], [], []>} : vector<8x32xbf16>, vector<32x32xbf16>, vector<8x32xf32> -> vector<8x32xf32>
    %c0_25 = arith.constant 0 : index
    %c0_26 = arith.constant 0 : index
    %48 = vector.load %arg10[%c0_25, %c0_26] : memref<1x32xbf16, #tpu.memory_space<vmem>>, vector<1x32xbf16>
    %49 = arith.extf %48 : vector<1x32xbf16> to vector<1x32xf32>
    %50 = vector.broadcast %49 : vector<1x32xf32> to vector<8x32xf32>
    %51 = arith.addf %47, %50 : vector<8x32xf32>
    %cst_27 = arith.constant 0.000000e+00 : f32
    %52 = vector.broadcast %cst_27 : f32 to vector<8x32xf32>
    %53 = arith.maximumf %51, %52 : vector<8x32xf32>
    %c0_28 = arith.constant 0 : index
    %c0_29 = arith.constant 0 : index
    %54 = vector.load %arg11[%c0_28, %c0_29] : memref<1x32xbf16, #tpu.memory_space<vmem>>, vector<1x32xbf16>
    %55 = arith.truncf %53 : vector<8x32xf32> to vector<8x32xbf16>
    %cst_30 = arith.constant dense<0.000000e+00> : vector<1x8xf32>
    %56 = tpu.matmul %54, %55, %cst_30 {dimension_numbers = #tpu.dot_dimension_numbers<[1], [1], [0], [0], [0, 0, 1, 0], [], []>} : vector<1x32xbf16>, vector<8x32xbf16>, vector<1x8xf32> -> vector<1x8xf32>
    %c0_31 = arith.constant 0 : index
    %c0_32 = arith.constant 0 : index
    %57 = memref.load %arg13[%c0_31, %c0_32] : memref<1x1xf32, #tpu.memory_space<smem>>
    %58 = vector.broadcast %57 : f32 to vector<1x8xf32>
    %59 = arith.addf %56, %58 : vector<1x8xf32>
    %60 = vector.shape_cast %59 : vector<1x8xf32> to vector<1x1x8xf32>
    %c0_33 = arith.constant 0 : index
    %c0_34 = arith.constant 0 : index
    %c0_35 = arith.constant 0 : index
    %61 = vector.load %arg14[%c0_33, %c0_34, %c0_35] : memref<1x1x8xf32, #tpu.memory_space<vmem>>, vector<1x1x8xf32>
    tpu.vector_store %arg14[%c0_33, %c0_34, %c0_35], %60 {strides = array<i32>} : memref<1x1x8xf32, #tpu.memory_space<vmem>>, vector<1x1x8xf32>,
    return
  }
  func.func @transform_0(%arg0: i32) -> (i32, i32) {
    %c0_i32 = arith.constant 0 : i32
    %c0_i32_0 = arith.constant 0 : i32
    return %arg0, %c0_i32 : i32, i32
  }
  func.func @transform_1(%arg0: i32) -> (i32, i32) {
    %c0_i32 = arith.constant 0 : i32
    %c0_i32_0 = arith.constant 0 : i32
    return %arg0, %c0_i32 : i32, i32
  }
  func.func @transform_2(%arg0: i32) -> (i32, i32) {
    %c0_i32 = arith.constant 0 : i32
    %c0_i32_0 = arith.constant 0 : i32
    return %arg0, %c0_i32 : i32, i32
  }
  func.func @transform_3(%arg0: i32) -> (i32, i32) {
    %c0_i32 = arith.constant 0 : i32
    %c0_i32_0 = arith.constant 0 : i32
    return %arg0, %c0_i32 : i32, i32
  }
  func.func @transform_4(%arg0: i32) -> (i32, i32) {
    %c0_i32 = arith.constant 0 : i32
    %c0_i32_0 = arith.constant 0 : i32
    %c0_i32_1 = arith.constant 0 : i32
    return %c0_i32, %c0_i32_0 : i32, i32
  }
  func.func @transform_5(%arg0: i32) -> (i32, i32) {
    %c0_i32 = arith.constant 0 : i32
    %c0_i32_0 = arith.constant 0 : i32
    %c0_i32_1 = arith.constant 0 : i32
    return %c0_i32, %c0_i32_0 : i32, i32
  }
  func.func @transform_6(%arg0: i32) -> (i32, i32) {
    %c0_i32 = arith.constant 0 : i32
    %c0_i32_0 = arith.constant 0 : i32
    %c0_i32_1 = arith.constant 0 : i32
    return %c0_i32, %c0_i32_0 : i32, i32
  }
  func.func @transform_7(%arg0: i32) -> (i32, i32) {
    %c0_i32 = arith.constant 0 : i32
    %c0_i32_0 = arith.constant 0 : i32
    %c0_i32_1 = arith.constant 0 : i32
    return %c0_i32, %c0_i32_0 : i32, i32
  }
  func.func @transform_8(%arg0: i32) -> (i32, i32) {
    %c0_i32 = arith.constant 0 : i32
    %c0_i32_0 = arith.constant 0 : i32
    %c0_i32_1 = arith.constant 0 : i32
    return %c0_i32, %c0_i32_0 : i32, i32
  }
  func.func @transform_9(%arg0: i32) -> (i32, i32) {
    %c0_i32 = arith.constant 0 : i32
    %c0_i32_0 = arith.constant 0 : i32
    %c0_i32_1 = arith.constant 0 : i32
    return %c0_i32, %c0_i32_0 : i32, i32
  }
  func.func @transform_10(%arg0: i32) -> (i32, i32) {
    %c0_i32 = arith.constant 0 : i32
    %c0_i32_0 = arith.constant 0 : i32
    %c0_i32_1 = arith.constant 0 : i32
    return %c0_i32, %c0_i32_0 : i32, i32
  }
  func.func @transform_11(%arg0: i32) -> (i32, i32) {
    %c0_i32 = arith.constant 0 : i32
    %c0_i32_0 = arith.constant 0 : i32
    %c0_i32_1 = arith.constant 0 : i32
    return %c0_i32, %c0_i32_0 : i32, i32
  }
  func.func @transform_12(%arg0: i32) -> (i32, i32) {
    %c0_i32 = arith.constant 0 : i32
    %c0_i32_0 = arith.constant 0 : i32
    %c0_i32_1 = arith.constant 0 : i32
    return %c0_i32, %c0_i32_0 : i32, i32
  }
  func.func @transform_13(%arg0: i32) -> (i32, i32, i32) {
    %c0_i32 = arith.constant 0 : i32
    %c0_i32_0 = arith.constant 0 : i32
    %c0_i32_1 = arith.constant 0 : i32
    return %arg0, %c0_i32, %c0_i32_0 : i32, i32, i32
  }
}

</mosaic_0001>

<bundles_post_ra>
// kernel: tpu_custom_call.1
= control target key start
LH: loop header
LB: loop body
LE: loop exit
PB: predicated region body
PF: predicated region fallthrough
CT: control target
= control target key end

     0   :  { %s1719_s0 = inlined_call_operand.hbm [shape: bf16[20,32], index: 0, kind: input, shape index: {}]   ;;  %s1720_s1 = inlined_call_operand.hbm [shape: bf16[20,32], index: 1, kind: input, shape index: {}]   ;;  %s1721_s2 = inlined_call_operand.vmem [shape: bf16[20,32], index: 2, kind: input, shape index: {}]   ;;  %s1722_s3 = inlined_call_operand.hbm [shape: bf16[20,32], index: 3, kind: input, shape index: {}]   ;;  %s1723_s4 = inlined_call_operand.hbm [shape: bf16[64,64], index: 4, kind: input, shape index: {}]   ;;  %s1724_s5 = inlined_call_operand.vmem [shape: bf16[1,64], index: 5, kind: input, shape index: {}]   ;;  %s1725_s6 = inlined_call_operand.vmem [shape: bf16[1,64], index: 6, kind: input, shape index: {}]   ;;  %s1726_s7 = inlined_call_operand.vmem [shape: bf16[1,32], index: 7, kind: input, shape index: {}]   ;;  %s1727_s8 = inlined_call_operand.vmem [shape: bf16[32,32], index: 8, kind: input, shape index: {}]   ;;  %s1728_s9 = inlined_call_operand.vmem [shape: bf16[1,32], index: 9, kind: input, shape index: {}]   ;;  %s1729_s10 = inlined_call_operand.vmem [shape: bf16[1,32], index: 10, kind: input, shape index: {}]   ;;  %s1730_s11 = inlined_call_operand.<no memory space> [shape: f32[1,1], index: 11, kind: input, shape index: {}]   ;;  %s1731_s12 = inlined_call_operand.<no memory space> [shape: f32[1,1], index: 12, kind: input, shape index: {}]   ;;  %s1732_s13 = inlined_call_operand.hbm [shape: f32[3,1,8], index: 13, kind: output, shape index: {}]  }
   0x1   :  { %1752 = sst [smem:[#allocation23_spill]] %s1720_s1 }
   0x2   :  { %1753 = sst [smem:[#allocation24_spill]] %s1725_s6 }
   0x3   :  { %1754 = sst [smem:[#allocation25_spill]] %s1726_s7 }
   0x4   :  { %1755 = sst [smem:[#allocation26_spill]] %s1727_s8 }
   0x5   :  { %1756 = sst [smem:[#allocation27_spill]] %s1728_s9 }
   0x6   :  { %1757 = sst [smem:[#allocation28_spill]] %s1729_s10 }
   0x7   :  { %1758 = sst [smem:[#allocation29_spill]] %s1732_s13 }
   0x8   :  { %18 = sst [smem:[#allocation2]] %s1730_s11 }
   0x9   :  { %19 = sst [smem:[#allocation3]] %s1731_s12 }
   0xa   :  { %20 = vsyncpa [#allocation5], 0 }
   0xb   :  { %22 = vsyncpa [#allocation5 + $0x1], 0 }
   0xc   :  { %23 = vsyncpa [#allocation8], 0 }
   0xd   :  { %25 = vsyncpa [#allocation8 + $0x1], 0 }
   0xe   :  { %26 = vsyncpa [#allocation11], 0 }
   0xf   :  { %27 = vsyncpa [#allocation6], 0 }
  0x10   :  { %29 = vsyncpa [#allocation6 + $0x1], 0  ;;  %s1388_s29 = smov 0   ;;  %s1390_s30 = smov 0  }
  0x11   :  { %s1392_s14 = smov 0   ;;  %s1394_s15 = smov 0  }
  0x12 LB: > { %1759 = sst [smem:[#allocation17_spill]] %s1287_s29  ;;  %s1409_s11 = sadd.s32 1, %s1299_s15   ;;  %s1299_s15 = sphi %s1394_s15, %s1795_s15   ;;  %s1295_s14 = sphi %s1392_s14, %s1799_s14   ;;  %s1291_s30 = sphi %s1390_s30, %s1798_s30   ;;  %s1287_s29 = sphi %s1388_s29, %s1797_s29  }
  0x13   : > { %1760 = sst [smem:[#allocation18_spill]] %s1299_s15  ;;  %s42_s12 = sadd.s32 1, %s1295_s14 }
  0x14   : > { %1761 = sst [smem:[#allocation19_spill]] %s1409_s11  ;;  %s39_s16 = ssub.s32 %s1299_s15, %s1409_s11 }
  0x15   : > { %p1734_p0 = scmp.ne.s32.totalorder %s1295_s14, %s1291_s30  ;;  %p40_p1 = scmp.eq.s32.totalorder %s39_s16, 0 }
  0x16   : > { %p50_p2 = scmp.eq.s32.totalorder %s1299_s15, 0  ;;  %p1055_p3 = scmp.lt.s32.totalorder %s1299_s15, 3 }
  0x17   : > { %s1419_s17 = scalar_select %p40_p1, %s1295_s14, %s42_s12  }
  0x18   : > { %p51_p4 = por %p50_p2, %p1734_p0  ;;  %s1733_s18 = sand.u32 1, %s1295_s14  }
  0x19   : > { %1762 = sst [smem:[#allocation20_spill]] %s1419_s17  ;;  %s1427_s19 = sshll.u32 %s1733_s18, 2 }
  0x1a   : > { %s1430_s20 = sshll.u32 %s1299_s15, 6  ;;  %p1432_p5 = pnand %p1055_p3, %p51_p4 }
  0x1b   : > { %s427_s22 = sand.u32 1, %s1299_s15   ;;  %s1764_s1 = sld [smem:[#allocation23_spill]] }
  0x1c   : > { %s1763_s21 = scalar_select %p1432_p5, 1, 0 }
  0x1d   : > { %s431_s26 = scalar_lea.vmem [#allocation7], %s1427_s19  ;;  %s1446_s28 = scalar_lea.sflag [#allocation8], %s427_s22 }
  0x1e   : > { %s438_s27 = sshll.u32 %s431_s26, 4  ;;  %p1452_p7 = pneg %p1432_p5  ;;  %s1444_s27 = int_to_ptr.vmem [resolvable:$true] %s438_s27 }
  0x20   : > { %s1765_s16 = scalar_select %p1452_p7, 1, 0 }
  0x21   : > { %s1441_s25 = scalar_lea.hbm %s1764_s1, %s1430_s20  ;;  %s1112_s18 = scalar_lea.hbm %s1764_s1, 192 }
  0x22   : > { %s1107_s12 = scalar_lea.hbm %s1441_s25, 64  ;;  %p1113_p10 = scmp.lt.u32.totalorder %s1441_s25, %s1764_s1 }
  0x23   : > { %p1108_p6 = scmp.ne.s32.totalorder %s1441_s25, %s1107_s12  ;;  %p1114_p11 = scmp.lt.u32.totalorder %s1112_s18, %s1107_s12 }
  0x24   : > { %p1116_p13 = scmp.lt.u32.totalorder %s1107_s12, %s1441_s25 }
  0x25   : > { %p1110_p8 = pnand %p1452_p7, %p1108_p6  ;;  %p1115_p12 = por %p1114_p11, %p1113_p10 }
  0x27   : > { %p1111_p9 = pneg %p1110_p8  ;;  %p1117_p1 = por %p1116_p13, %p1115_p12 }
  0x29   : > { %p1118_p2 = pnand %p1117_p1, %p1111_p9 }
  0x2b   : > { %1121 = shalt.err (!%p1118_p2)
}
  0x2c   : > { %s1122_s22 = scalar_lea.vmem %s1444_s27, 64  ;;  %s1301_s23 = smov [#allocation7]  }
  0x2d   : > { %p1123_p3 = scmp.ne.s32.totalorder %s1444_s27, %s1122_s22  ;;  %s1127_s24 = sshll.u32 %s1301_s23, 4  ;;  %s1128_s24 = int_to_ptr.vmem [resolvable:$false] %s1127_s24 }
  0x2e   : > { %s1129_s17 = scalar_lea.vmem %s1128_s24, 128  ;;  %p1130_p8 = scmp.lt.s32.totalorder %s1444_s27, %s1128_s24 }
  0x2f   : > { %p1125_p4 = pnand %p1123_p3, %p1452_p7  ;;  %p1131_p0 = scmp.lt.s32.totalorder %s1129_s17, %s1122_s22 }
  0x31   : > { %p1126_p6 = pneg %p1125_p4  ;;  %p1132_p10 = por %p1131_p0, %p1130_p8 }
  0x33   : > { %p1133_p11 = pnand %p1132_p10, %p1126_p6 }
  0x35   : > { %1136 = shalt.err (!%p1133_p11)
}
  0x36   : > { %1046 = dma.hbm_to_vmem [thread:$0]  (!%p1432_p5), %s1441_s25, 64, %s1444_s27, %s1446_s28  }
  0x37   : > { %s1477_s18 = sadd.s32 4294967295, %s1299_s15   ;;  %s959_s12 = sadd.s32 4294967294, %s1299_s15  }
  0x38   : > { %p55_p0 = scmp.ne.s32.totalorder %s1291_s30, %s1287_s29  ;;  %p1744_p9 = scmp.eq.s32.totalorder %s1477_s18, 0 }
  0x39   : > { %p346_p12 = scmp.eq.s32.totalorder %s1477_s18, 2  ;;  %p352_p13 = scmp.eq.s32.totalorder %s959_s12, 2 }
  0x3a   : > { %p1486_p1 = por %p1744_p9, %p55_p0  ;;  %p960_p2 = scmp.ge.s32.totalorder %s1299_s15, 1 }
  0x3b   : > { %p1767_p3 = scmp.ne.s32.totalorder %s1295_s14, %s1291_s30  ;;  %p1498_p6 = por %p352_p13, %p55_p0 }
  0x3c   : > { %s1766_s26 = scalar_select %p1486_p1, 1, 0 }
  0x3d   : > { %p1494_p4 = por %p346_p12, %p1767_p3  ;;  %p359_p8 = scmp.lt.s32.totalorder %s1299_s15, 4 }
  0x3e   : > { %s1770_s27 = scalar_select %p1498_p6, 1, 0 }
  0x3f   : > { %s1768_s25 = scalar_select %p1494_p4, 1, 0 }
  0x40   : > { %1771 = sst [smem:[#allocation22_spill]] %s1770_s27  ;;  %p1503_p10 = pnand %p960_p2, %p359_p8 }
  0x41   : > { %1769 = sst [smem:[#allocation21_spill]] %s1768_s25  ;;  %s1302_s23 = smov [#allocation10]  }
  0x42   : > { %s1772_s22 = scalar_select %p1503_p10, 1, 0 }
  0x43   : > { %s371_s24 = sshll.u32 %s1302_s23, 4  ;;  %p1036_p11 = pneg %p1503_p10  ;;  %s1507_s24 = int_to_ptr.vmem [resolvable:$true] %s371_s24 }
  0x44   : > { %s1515_s1 = scalar_lea.hbm %s1719_s0, %s1430_s20  ;;  %s413_s27 = scalar_lea.vmem [#allocation4], %s1427_s19 }
  0x45   : > { %p1519_p0 = pnand %p1036_p11, %p1744_p9  ;;  %s420_s29 = sshll.u32 %s413_s27, 4  ;;  %s1524_s29 = int_to_ptr.vmem [resolvable:$true] %s420_s29 }
  0x46   : > { %s1530_s13 = scalar_lea.hbm %s1722_s3, %s1430_s20  ;;  %s1137_s17 = scalar_lea.hbm %s1723_s4, 512 }
  0x47   : > { %p1138_p12 = scmp.ne.s32.totalorder %s1723_s4, %s1137_s17  ;;  %p1139_p13 = pneg %p1519_p0 }
  0x48   : > { %p1144_p8 = scmp.lt.u32.totalorder %s1137_s17, %s1723_s4 }
  0x49   : > { %p1140_p2 = pnand %p1139_p13, %p1138_p12 }
  0x4b   : > { %p1141_p3 = pneg %p1140_p2 }
  0x4d   : > { %p1146_p11 = pnand %p1144_p8, %p1141_p3 }
  0x4f   : > { %1149 = shalt.err (!%p1146_p11)
}
  0x50   : > { %s1150_s15 = scalar_lea.vmem %s1507_s24, 512  ;;  %p1158_p1 = scmp.lt.s32.totalorder %s1507_s24, %s1507_s24 }
  0x51   : > { %p1151_p9 = scmp.ne.s32.totalorder %s1507_s24, %s1150_s15  ;;  %p1159_p10 = scmp.lt.s32.totalorder %s1150_s15, %s1150_s15 }
  0x53   : > { %p1153_p6 = pnand %p1151_p9, %p1139_p13  ;;  %p1160_p5 = por %p1159_p10, %p1158_p1 }
  0x55   : > { %p1154_p4 = pneg %p1153_p6 }
  0x57   : > { %p1161_p7 = pnand %p1160_p5, %p1154_p4 }
  0x59   : > { %1164 = shalt.err (!%p1161_p7)
}
  0x5a   : > { %s1303_s9 = smov 64   ;;  %s1304_s8 = smov 4  }
  0x5b   : > { %1039 = dma.hbm_to_vmem [thread:$0]  (!%p1519_p0), %s1723_s4, 512, %s1507_s24, [#allocation11], %s1303_s9, %s1303_s9, %s1304_s8  }
  0x5c   : > { %s1774_s25 = sand.u32 1, %s1295_s14   ;;  %s1165_s17 = scalar_lea.hbm %s1515_s1, 64 }
  0x5d   : > { %s410_s23 = scalar_lea.sflag [#allocation5], %s1774_s25  ;;  %p1166_p5 = scmp.ne.s32.totalorder %s1515_s1, %s1165_s17 }
  0x5e   : > { %p1775_p7 = scmp.ne.s32.totalorder %s1765_s16, 0  ;;  %s1170_s15 = scalar_lea.hbm %s1719_s0, 192 }
  0x5f   : > { %p1171_p4 = scmp.lt.u32.totalorder %s1515_s1, %s1719_s0  ;;  %p1172_p6 = scmp.lt.u32.totalorder %s1170_s15, %s1165_s17 }
  0x60   : > { %p1168_p9 = pnand %p1166_p5, %p1775_p7  ;;  %p1174_p12 = scmp.lt.u32.totalorder %s1165_s17, %s1515_s1 }
  0x61   : > { %p1173_p10 = por %p1172_p6, %p1171_p4 }
  0x62   : > { %p1169_p1 = pneg %p1168_p9 }
  0x63   : > { %p1175_p13 = por %p1174_p12, %p1173_p10 }
  0x65   : > { %p1176_p0 = pnand %p1175_p13, %p1169_p1 }
  0x67   : > { %1179 = shalt.err (!%p1176_p0)
}
  0x68   : > { %s1180_s11 = scalar_lea.vmem %s1524_s29, 64  ;;  %s1305_s24 = smov [#allocation4]  }
  0x69   : > { %p1181_p2 = scmp.ne.s32.totalorder %s1524_s29, %s1180_s11  ;;  %s1185_s9 = sshll.u32 %s1305_s24, 4  ;;  %s1186_s9 = int_to_ptr.vmem [resolvable:$false] %s1185_s9 }
  0x6a   : > { %s1187_s6 = scalar_lea.vmem %s1186_s9, 128  ;;  %p1188_p11 = scmp.lt.s32.totalorder %s1524_s29, %s1186_s9 }
  0x6b   : > { %p1183_p3 = pnand %p1181_p2, %p1775_p7  ;;  %p1189_p5 = scmp.lt.s32.totalorder %s1187_s6, %s1180_s11 }
  0x6d   : > { %p1184_p8 = pneg %p1183_p3  ;;  %p1190_p9 = por %p1189_p5, %p1188_p11 }
  0x6f   : > { %p1191_p4 = pnand %p1190_p9, %p1184_p8 }
  0x71   : > { %1194 = shalt.err (!%p1191_p4)
}
  0x72   : > { %p1776_p1 = scmp.ne.s32.totalorder %s1763_s21, 0  ;;  %s456_s7 = scalar_lea.vmem [#allocation9], %s1427_s19 }
  0x73   : > { %s463_s8 = sshll.u32 %s456_s7, 4  ;;  %s1195_s10 = scalar_lea.hbm %s1530_s13, 64  ;;  %s464_s8 = int_to_ptr.vmem [resolvable:$true] %s463_s8 }
  0x74   : > { %1043 = dma.hbm_to_vmem [thread:$0]  (!%p1776_p1), %s1515_s1, 64, %s1524_s29, %s410_s23  }
  0x75   : > { %p1196_p6 = scmp.ne.s32.totalorder %s1530_s13, %s1195_s10  ;;  %s1200_s17 = scalar_lea.hbm %s1722_s3, 192 }
  0x76   : > { %p1201_p13 = scmp.lt.u32.totalorder %s1530_s13, %s1722_s3  ;;  %p1202_p0 = scmp.lt.u32.totalorder %s1200_s17, %s1195_s10 }
  0x77   : > { %p1198_p10 = pnand %p1196_p6, %p1775_p7  ;;  %p1204_p3 = scmp.lt.u32.totalorder %s1195_s10, %s1530_s13 }
  0x78   : > { %p1203_p2 = por %p1202_p0, %p1201_p13 }
  0x79   : > { %p1199_p12 = pneg %p1198_p10 }
  0x7a   : > { %p1205_p8 = por %p1204_p3, %p1203_p2 }
  0x7c   : > { %p1206_p11 = pnand %p1205_p8, %p1199_p12 }
  0x7e   : > { %1209 = shalt.err (!%p1206_p11)
}
  0x7f   : > { %s1210_s1 = scalar_lea.vmem %s464_s8, 64  ;;  %s1306_s29 = smov [#allocation9]  }
  0x80   : > { %p1211_p5 = scmp.ne.s32.totalorder %s464_s8, %s1210_s1  ;;  %s1215_s19 = sshll.u32 %s1306_s29, 4  ;;  %s1216_s19 = int_to_ptr.vmem [resolvable:$false] %s1215_s19 }
  0x81   : > { %s1217_s23 = scalar_lea.vmem %s1216_s19, 128  ;;  %p1218_p6 = scmp.lt.s32.totalorder %s464_s8, %s1216_s19 }
  0x82   : > { %p1213_p9 = pnand %p1211_p5, %p1775_p7  ;;  %p1219_p10 = scmp.lt.s32.totalorder %s1217_s23, %s1210_s1 }
  0x84   : > { %p1214_p4 = pneg %p1213_p9  ;;  %p1220_p1 = por %p1219_p10, %p1218_p6 }
  0x86   : > { %p1221_p0 = pnand %p1220_p1, %p1214_p4 }
  0x88   : > { %1224 = shalt.err (!%p1221_p0)
}
  0x89   : > { %p1777_p13 = scmp.ne.s32.totalorder %s1763_s21, 0  ;;  %p1778_p12 = scmp.ne.s32.totalorder %s1772_s22, 0 }
  0x8a   : > { %s1598_s16 = sand.u32 (!%p1778_p12), 1, %s1291_s30   ;;  %p1779_p7 = scmp.ne.s32.totalorder (!%p1778_p12), %s1766_s26, 0 }
  0x8b   : > { %1049 = dma.hbm_to_vmem [thread:$0]  (!%p1777_p13), %s1530_s13, 64, %s464_s8, %s1446_s28  }
  0x8c   : > { %472 = sbr.rel (%p1778_p12) target bundleno = 1422 (0x58e), region = 72  ;;  %s1601_s15 = sshll.u32 (!%p1778_p12), %s1598_s16, 2 }
  0x8d   : > { %s475_s11 = scalar_lea.sflag (!%p1778_p12), [#allocation5], %s1598_s16  ;;  %s478_s24 = scalar_lea.vmem (!%p1778_p12), [#allocation4], %s1601_s15 }
  0x93   : > { %1270 = dma.done.wait (%p1779_p7), %s475_s11, 64  }
  0x94   : > { %1272 = vsyncadd (%p1779_p7), %s475_s11, 4294967232  ;;  %s483_s13 = sand.u32 1, %s1477_s18   ;;  %s487_s28 = scalar_lea.vmem [#allocation7], %s1601_s15 }
  0x95   : > { %s484_s21 = scalar_lea.sflag [#allocation8], %s483_s13 }
  0x96   : > { %1274 = dma.done.wait (%p1779_p7), %s484_s21, 128  }
  0x97   : > { %1276 = vsyncadd (%p1779_p7), %s484_s21, 4294967168  ;;  %s496_s22 = scalar_lea.vmem [#allocation9], %s1601_s15  ;;  %p1780_p1 = scmp.eq.s32.totalorder %s1477_s18, 0 }
  0x99   : > { %1278 = dma.done.wait (%p1780_p1), [#allocation11], 512   ;;  %p1781_p2 = pmov %p1780_p1 }
  0x9a   : > { %p556_p3 = scmp.lt.s32.totalorder %s1477_s18, 2  ;;  %v1307_v0 = vmov 0.0   ;;  %vm1308_vm0 = vmmov 0   ;;  %v565_v2 = vld [vmem:[%s496_s22] sm:$0xf]  ;;  %v1097_v4 = vld [vmem:[#allocation10] sm:$0xff]   ;;  %v586_v14 = vlaneseq }
  0x9b   : > { %1280 = vsyncadd (%p1781_p2), [#allocation11], 4294966784  ;;  %998 = vmatprep.subr.bf16.mxu0 %v1307_v0  ;;  %1010 = vmatprep.subr.bf16.mxu1 %v1307_v0  ;;  %v1098_v6 = vld [vmem:[#allocation10 + $0x8] sm:$0xff]   ;;  %s1309_s10 = smov 32   ;;  %v1099_v7 = vld [vmem:[#allocation10 + $0x10] sm:$0xff]   ;;  %vm572_vm1 = vcmask 261120  }
  0x9c   : > { %s557_s9 = scalar_select %p556_p3, %s1477_s18, 2  ;;  %1006 = vmatprep.mubr.msk.bf16.mxu0 %vm1308_vm0, %v1307_v0  ;;  %1014 = vmatprep.mubr.msk.bf16.mxu1 %vm1308_vm0, %v1307_v0  ;;  %v1100_v8 = vld [vmem:[#allocation10 + $0x18] sm:$0xff]   ;;  %v561_v9 = vld [vmem:[%s478_s24] sm:$0xf]  ;;  %v562_v10 = vld [vmem:[%s487_s28] sm:$0xf] }
  0x9d   : > { %999 = vmatpush3.bf16.msra.mxu0 %v1097_v4  ;;  %v563_v11 = vadd.bf16 %v562_v10, %v561_v9  ;;  %vm614_vm2 = vcmask 523264   ;;  %v587_v15 = vshrl.u32 %v586_v14, 7  ;;  %v584_v16 = vld [vmem:[%s1724_s5] sm:$0x1]  ;;  %s1782_s27 = sld [smem:[#allocation24_spill]]  ;;  %s668_s1 = sld [smem:[#allocation2]] }
  0x9e   : > { %s974_s26 = sshll.u32 %s557_s9, 2  ;;  %1000 = vmatprep.subr.bf16.mxu0 %v1307_v0  ;;  %v585_v17 = vunpack.c.l.bf16 %v584_v16  ;;  %s1783_s23 = sld [smem:[#allocation25_spill]]  ;;  %vm813_vm3 = vcmask 57344  }
  0x9f   : > { %s559_s8 = scalar_lea.vmem %s1721_s2, %s974_s26  ;;  %v588_v18 = vsub.s32 0, %v587_v15  ;;  %s1310_s15 = smov 96  }
  0xa0   : > { %v564_v1 = vld [vmem:[%s559_s8] sm:$0xf]  ;;  %s1784_s13 = sld [smem:[#allocation26_spill]]  ;;  %s1785_s26 = sld [smem:[#allocation27_spill]] }
  0xa1   : > { %v566_v3 = vadd.bf16 %v565_v2, %v564_v1  ;;  %1001 = vmatpush3.bf16.msra.mxu0 %v1098_v6  ;;  %v589_v20 = vrot.slane %v585_v17, %v588_v18  ;;  %s1786_s8 = sld [smem:[#allocation28_spill]]  ;;  %s1787_s20 = sld [smem:[#allocation21_spill]] }
  0xa2   : > { %1002 = vmatprep.subr.bf16.mxu0 %v1307_v0  ;;  %s985_s25 = sshll.u32 %s1477_s18, 4  ;;  %s555_s17 = scalar_lea.vmem [#allocation12], %s1598_s16 }
  0xa3   : > { %v975_v5 = vcombine.low %v566_v3, %v566_v3  ;;  %v658_v19 = vld [vmem:[%s1782_s27] sm:$0x1]  ;;  %v669_v33 = vstv %s668_s1  ;;  %s828_s12 = sshll.u32 %s555_s17, 4  ;;  %s1788_s29 = sld [smem:[#allocation29_spill]]  ;;  %s1678_s12 = int_to_ptr.vmem [resolvable:$true] %s828_s12 }
  0xa4   : > { %v659_v21 = vunpack.c.l.bf16 %v658_v19  ;;  %v672_v31 = vld [vmem:[%s1783_s23] sm:$0x1]  ;;  %s816_s18 = scalar_lea.sflag [#allocation6], %s1598_s16  ;;  %s1311_s11 = smov [#allocation12]  }
  0xa5   : > { %570 = vrot.lane.b32.xlu0 %v975_v5, %s1309_s10  ;;  %1003 = vmatpush3.bf16.msra.mxu0 %v1099_v7  ;;  %v673_v32 = vunpack.c.l.bf16 %v672_v31  ;;  %s765_s10 = sld [smem:[#allocation3]]  ;;  %s1229_s24 = sshll.u32 %s1311_s11, 4  ;;  %s1230_s24 = int_to_ptr.vmem [resolvable:$false] %s1229_s24 }
  0xa6   : > { %1004 = vmatprep.subr.bf16.mxu0 %v1307_v0  ;;  %v663_v25 = vrot.slane %v659_v21, %v588_v18  ;;  %v1101_v45 = vld [vmem:[%s1784_s13] sm:$0xff]   ;;  %v1102_v46 = vld [vmem:[%s1784_s13 + $0x8] sm:$0xff]   ;;  %s1231_s21 = scalar_lea.vmem %s1230_s24, 32  ;;  %p1232_p4 = scmp.lt.s32.totalorder %s1678_s12, %s1230_s24 }
  0xa7   : > { %v677_v36 = vrot.slane %v673_v32, %v588_v18  ;;  %1011 = vmatpush3.bf16.msra.mxu1 %v1101_v45  ;;  %v701_v54 = vld [vmem:[%s1785_s26] sm:$0x1]  ;;  %p1790_p11 = scmp.ne.s32.totalorder %s1787_s20, 0 }
  0xa8   : > { %1012 = vmatprep.subr.bf16.mxu1 %v1307_v0  ;;  %v702_v55 = vunpack.c.l.bf16 %v701_v54 }
  0xa9   : > { %1005 = vmatpush3.bf16.msra.mxu0 %v1100_v8  ;;  %s1789_s19 = smov %s1788_s29  ;;  %s1676_s23 = scalar_lea.hbm %s1788_s29, %s985_s25 }
  0xaa   : > { %v706_v56 = vrot.slane %v702_v55, %v588_v18 }
  0xab   : > { %1013 = vmatpush3.bf16.msra.mxu1 %v1102_v46  ;;  %v766_v2 = vstv %s765_s10 }
  0xac   : > { %1018 = vmatprep.subr.bf16.mxu1 %v1307_v0 }
 0x117   : > { %v571_v12 = vpop.permute.xlu0 %570 }
 0x118   : > { %v575_v13 = vsel %vm572_vm1, %v563_v11, %v571_v12 }
 0x119   : > { %1007 = vmatmul.mubr.msk.bf16.vlgmr.msra.gmra.mrb[0].mxu0 %vm614_vm2, %v575_v13 }
 0x1ec   : > { %v651_v22 = vpop.f32.mrb[0].mxu0 }
 0x1ed   : > { %v652_v23 = vadd.f32 %v651_v22, %v589_v20  ;;  %v1008_v24 = vpop.f32.mrb[1].mxu0 }
 0x1ee   : > { %v654_v26 = vpop.f32.mrb[2].mxu0 }
 0x1ef   : > { %v657_v27 = vmax.f32 %v652_v23, 0.0  ;;  %v1009_v28 = vpop.f32.mrb[3].mxu0 }
 0x1f1   : > { %v664_v29 = vmul.f32 %v663_v25, %v657_v27 }
 0x1f3   : > { %v665_v30 = vsel %vm614_vm2, %v664_v29, 0.0 }
 0x1f4   : > { %666 = vadd.xlane.f32.xlu0 %v665_v30 }
 0x281   : > { %v667_v34 = vpop.xlane.xlu0 %666 }
 0x282   : > { %v670_v35 = vadd.f32 %v669_v33, %v667_v34 }
 0x284   : > { %v671_v37 = vmax.f32 %v670_v35, 0.0 }
 0x286   : > { %v678_v38 = vmul.f32 %v677_v36, %v671_v37 }
 0x288   : > { %v679_v39 = vsel %vm572_vm1, %v678_v38, -inf }
 0x289   : > { %680 = vmax.xlane.f32.xlu1 %v679_v39 }
 0x316   : > { %v681_v40 = vpop.xlane.xlu1 %680 }
 0x317   : > { %v682_v41 = vsub.f32 %v678_v38, %v681_v40 }
 0x319   : > { %v683_v42 = vmul.f32 1.442695, %v682_v41 }
 0x31b   : > { %1103 = vpow2.f32 %v683_v42 }
 0x325   : > { %v1104_v43 = vpop.eup %1103 }
 0x326   : > { %v685_v44 = vsel %vm572_vm1, %v1104_v43, 0.0 }
 0x327   : > { %686 = vadd.xlane.f32.xlu1 %v685_v44 }
 0x338   : > { %692 = vrot.lane.b32.xlu1 %v657_v27, %s1310_s15  ;;  %s1225_s15 = scalar_lea.vmem %s1678_s12, 16 }
 0x339   : > { %p1226_p8 = scmp.ne.s32.totalorder %s1678_s12, %s1225_s15  ;;  %p1233_p6 = scmp.lt.s32.totalorder %s1231_s21, %s1225_s15 }
 0x33b   : > { %p1227_p5 = pnand %p1226_p8, %p1790_p11  ;;  %p1234_p10 = por %p1233_p6, %p1232_p4 }
 0x33d   : > { %p1228_p9 = pneg %p1227_p5 }
 0x33f   : > { %p1235_p0 = pnand %p1234_p10, %p1228_p9 }
 0x3b4   : > { %v687_v47 = vpop.xlane.xlu1 %686 }
 0x3b5   : > { %1105 = vrcp.f32 %v687_v47 }
 0x3b8   : > { %v693_v51 = vpop.permute.xlu1 %692 }
 0x3bf   : > { %v1106_v48 = vpop.eup %1105 }
 0x3c0   : > { %v689_v49 = vmul.f32 %v1106_v48, %v1104_v43 }
 0x3c2   : > { %v690_v50 = vmul.f32 %v689_v49, %v657_v27 }
 0x3c4   : > { %v695_v52 = vmul.f32 %v693_v51, %v690_v50 }
 0x3c6   : > { %v696_v53 = vpack.c.bf16 %v695_v52, %v695_v52 }
 0x3c8   : > { %1015 = vmatmul.mubr.msk.bf16.vlgmr.msra.gmra.mrb[0].mxu1 %vm572_vm1, %v696_v53 }
 0x3c9   : > { %1020 = vmatprep.mubr.msk.bf16.mxu1 %vm1308_vm0, %v1307_v0  ;;  %v763_v0 = vld [vmem:[%s1786_s8] sm:$0x1] }
 0x49b   : > { %v756_v57 = vpop.f32.mrb[0].mxu1 }
 0x49c   : > { %v757_v58 = vadd.f32 %v756_v57, %v706_v56  ;;  %v1016_v59 = vpop.f32.mrb[1].mxu1 }
 0x49d   : > { %v759_v60 = vpop.f32.mrb[2].mxu1 }
 0x49e   : > { %v762_v61 = vmax.f32 %v757_v58, 0.0  ;;  %v1017_v62 = vpop.f32.mrb[3].mxu1 }
 0x4a0   : > { %v764_v63 = vpack.c.bf16 %v762_v61, %v762_v61 }
 0x4a2   : > { %v771_v1 = vsel %vm572_vm1, %v764_v63, 0 }
 0x4a3   : > { %1019 = vmatpush3.bf16.xpose.msra.mxu1 %v771_v1 }
 0x4aa   : > { %1021 = vmatmul.mubr.msk.bf16.vlgmr.msra.gmra.mrb[4].mxu1 %vm572_vm1, %v763_v0 }
 0x57d   : > { %v807_v3 = vpop.f32.mrb[4].mxu1 }
 0x57e   : > { %v808_v4 = vadd.f32 %v807_v3, %v766_v2  ;;  %v1022_v5 = vpop.f32.mrb[5].mxu1 }
 0x57f   : > { %v810_v6 = vpop.f32.mrb[6].mxu1 }
 0x580   : > { %v1023_v7 = vpop.f32.mrb[7].mxu1  ;;  %814 = vst.msk [vmem:[%s555_s17] sm:$0x1] %vm813_vm3, %v808_v4 }
 0x581   : > { %1238 = shalt.err (!%p1235_p0)
}
 0x582   : > { %s1239_s16 = scalar_lea.hbm %s1676_s23, 16  ;;  %s1243_s9 = scalar_lea.hbm %s1789_s19, 48 }
 0x583   : > { %p1240_p13 = scmp.ne.s32.totalorder %s1676_s23, %s1239_s16  ;;  %p1244_p1 = scmp.lt.u32.totalorder %s1676_s23, %s1789_s19 }
 0x584   : > { %p1245_p2 = scmp.lt.u32.totalorder %s1243_s9, %s1239_s16  ;;  %p1247_p8 = scmp.lt.u32.totalorder %s1239_s16, %s1676_s23 }
 0x585   : > { %p1241_p12 = pnand %p1240_p13, %p1790_p11 }
 0x586   : > { %p1246_p3 = por %p1245_p2, %p1244_p1 }
 0x587   : > { %p1242_p7 = pneg %p1241_p12 }
 0x588   : > { %p1248_p5 = por %p1247_p8, %p1246_p3 }
 0x58a   : > { %p1249_p9 = pnand %p1248_p5, %p1242_p7 }
 0x58c   : > { %1252 = shalt.err (!%p1249_p9)
}
 0x58d   : > { %1034 = dma.vmem_to_hbm [thread:$0]  (%p1790_p11), %s1678_s12, 16, %s1676_s23, %s816_s18  }
 0x58e PF: > { %s1791_s7 = sld [smem:[#allocation18_spill]]  ;;  %s1792_s8 = sld [smem:[#allocation17_spill]] }
 0x58f   : > { %s1793_s10 = sld [smem:[#allocation22_spill]] }
 0x594   : > { %p1057_p4 = scmp.ge.s32.totalorder %s1791_s7, 2  ;;  %s840_s25 = sand.u32 1, %s1792_s8  }
 0x595   : > { %p1794_p6 = scmp.ne.s32.totalorder %s1793_s10, 0  ;;  %s841_s17 = scalar_lea.sflag [#allocation6], %s840_s25 }
 0x597   : > { %p1051_p10 = pnand %p1057_p4, %p1794_p6 }
 0x599   : > { %1282 = dma.done.wait (!%p1051_p10), %s841_s17, 16  }
 0x59a   : > { %1284 = vsyncadd (!%p1051_p10), %s841_s17, 4294967280  ;;  %s1795_s15 = sld [smem:[#allocation19_spill]]  ;;  %s1796_s27 = sld [smem:[#allocation20_spill]] }
 0x59b   : > { %s1797_s29 = smov %s1291_s30  ;;  %s1798_s30 = smov %s1295_s14 }
 0x5a0   : > { %p32_p0 = scmp.ge.s32.totalorder %s1795_s15, 5   ;;  %s1799_s14 = smov %s1796_s27 }
 0x5a2   :  { %34 = sbr.rel (!%p32_p0) target bundleno = 18 (0x12), region = 148 }
 0x5a9   :  { %845 = vsyncpa [#allocation5], 1 }
 0x5aa   :  { %847 = vsyncpa [#allocation5 + $0x1], 1 }
 0x5ab   :  { %848 = vsyncpa [#allocation8], 1 }
 0x5ac   :  { %850 = vsyncpa [#allocation8 + $0x1], 1 }
 0x5ad   :  { %851 = vsyncpa [#allocation11], 1 }
 0x5ae   :  { %852 = vsyncpa [#allocation6], 1 }
 0x5af   :  { %854 = vsyncpa [#allocation6 + $0x1], 1 }

</bundles_post_ra>
